<compile_context>
chip_gen: v7x
topology: tpu7x:2x2x1
jax: 0.10.0
libtpu: 0.0.40
codegen_flags: <defaults>
</compile_context>

<pallas_src>
import functools
import math

import numpy as np

import jax
import jax.numpy as jnp
from jax.experimental import pallas as pl
from jax.experimental.pallas import tpu as pltpu

_EPS = 1e-5


# ------------------------------- Pallas kernel -------------------------------

def _block_kernel(cfg, *refs):
    """Fused pre-activation BasicBlock forward for one batch tile.

    Activations are (Bt, rows, W*C) bf16 slabs (W folded into the lane axis).
    """
    equal, stride = cfg["equal"], cfg["stride"]
    Bt, Ho, H = cfg["Bt"], cfg["Ho"], cfg["H"]
    WCi, WCo = cfg["WCi"], cfg["WCo"]

    if equal:
        (x_ref, s1_ref, b1_ref, s2_ref, b2_ref,
         W1_ref, W2_ref, o_ref, lhs1_scr, lhs2_scr) = refs
        Wsc_ref = None
    else:
        (x_ref, s1_ref, b1_ref, s2_ref, b2_ref,
         W1_ref, W2_ref, Wsc_ref, o_ref, lhs1_scr, lhs2_scr) = refs

    # relu(bn1(x)) -- folded eval-mode BN, f32 VPU math (bf16 only at HBM).
    x = x_ref[...].astype(jnp.float32)                       # (Bt, Hk, WCi)
    a = jnp.maximum(x * s1_ref[...] + b1_ref[...], 0.0)
    a_bf = a.astype(jnp.bfloat16)

    # ---- conv1 LHS: shifted-row tap slabs packed along K (one big matmul) ----
    lhs1_scr[...] = jnp.zeros(lhs1_scr.shape, lhs1_scr.dtype)
    if stride == 1:                       # taps are rows ho-1 / ho / ho+1
        center = a_bf                     # (Bt, Ho, WCi)
        if Ho > 1:
            lhs1_scr[:, 1:, 0:WCi] = a_bf[:, :Ho - 1, :]
            lhs1_scr[:, :Ho - 1, 2 * WCi:3 * WCi] = a_bf[:, 1:, :]
        lhs1_scr[:, :, WCi:2 * WCi] = a_bf
    else:                                 # stride 2: rows arrive [even | odd]
        a_ev = a_bf[:, :Ho, :]            # original rows 2*ho
        a_od = a_bf[:, Ho:2 * Ho, :]      # original rows 2*ho + 1
        n_od = H - Ho                     # number of REAL odd rows (Ho or Ho-1)
        if Ho > 1:
            lhs1_scr[:, 1:, 0:WCi] = a_od[:, :Ho - 1, :]              # row 2ho-1
        lhs1_scr[:, :, WCi:2 * WCi] = a_ev                            # row 2ho
        if n_od > 0:
            lhs1_scr[:, :n_od, 2 * WCi:3 * WCi] = a_od[:, :n_od, :]   # row 2ho+1
        center = a_ev

    lhs1 = lhs1_scr[...].reshape(Bt * Ho, 3 * WCi)
    c1 = jnp.dot(lhs1, W1_ref[...],
                 preferred_element_type=jnp.float32)          # (Bt*Ho, WCo)

    # relu(bn2(.))
    h = jnp.maximum(c1 * s2_ref[...] + b2_ref[...], 0.0)
    # TODO(synk): F.dropout skipped -- drop_rate=0.0 and a no-op in eval mode.
    h3 = h.astype(jnp.bfloat16).reshape(Bt, Ho, WCo)

    # ---- conv2 (3x3, stride 1): same single big-K matmul ----
    lhs2_scr[...] = jnp.zeros(lhs2_scr.shape, lhs2_scr.dtype)
    if Ho > 1:
        lhs2_scr[:, 1:, 0:WCo] = h3[:, :Ho - 1, :]
        lhs2_scr[:, :Ho - 1, 2 * WCo:3 * WCo] = h3[:, 1:, :]
    lhs2_scr[:, :, WCo:2 * WCo] = h3

    lhs2 = lhs2_scr[...].reshape(Bt * Ho, 3 * WCo)
    c2 = jnp.dot(lhs2, W2_ref[...],
                 preferred_element_type=jnp.float32)          # (Bt*Ho, WCo)

    # ---- shortcut, fused in the same kernel ----
    if equal:
        res = x.reshape(Bt * Ho, WCi)                 # identity (WCi == WCo here)
    else:
        res = jnp.dot(center.reshape(Bt * Ho, WCi), Wsc_ref[...],
                      preferred_element_type=jnp.float32)  # 1x1 conv(relu(bn1(x)))

    o_ref[...] = (c2 + res).reshape(Bt, Ho, WCo).astype(o_ref.dtype)


# --------------------------- host-side preparation ---------------------------

def _fold_bn(gamma, beta, mean, var):
    g = np.asarray(gamma, np.float32)
    b = np.asarray(beta, np.float32)
    m = np.asarray(mean, np.float32)
    v = np.asarray(var, np.float32)
    scale = g / np.sqrt(v + _EPS)
    return scale, b - m * scale


def _tile_lanes(vec, c, cp, wdim):
    """Per-channel vector -> (1, wdim*cp) lane-tiled row, padded channels = 0."""
    buf = np.zeros((wdim, cp), np.float32)
    buf[:, :c] = np.asarray(vec, np.float32)[None, :]
    return jnp.asarray(buf.reshape(1, wdim * cp))


def _lane_pad(c, wdim):
    """Smallest Cp >= C with wdim*Cp a multiple of 128 (bounded at 2x), else C."""
    if (wdim * c) % 128 == 0:
        return c
    step = 128 // math.gcd(wdim, 128)
    cp = ((c + step - 1) // step) * step
    return cp if cp <= 2 * c else c


def _stacked_conv_w(w_oihw, stride, w_in, w_out, cin, cin_p, cout, cout_p):
    """(3*w_in*cin_p, w_out*cout_p) weight: kw taps, w-stride and zero padding
    folded in; the three kh taps stacked along the contraction axis."""
    w = np.asarray(w_oihw, np.float32).transpose(2, 3, 1, 0)   # (kh, kw, cin, cout)
    M = np.zeros((3, w_in * cin_p, w_out * cout_p), np.float32)
    for kh in range(3):
        for kw in range(3):
            for wo in range(w_out):
                iw = stride * wo + kw - 1
                if 0 <= iw < w_in:
                    M[kh, iw * cin_p:iw * cin_p + cin,
                      wo * cout_p:wo * cout_p + cout] = w[kh, kw]
    return jnp.asarray(M.reshape(3 * w_in * cin_p, w_out * cout_p), jnp.bfloat16)


def _shortcut_w(w_oihw, stride, w_in, w_out, cin, cin_p, cout, cout_p):
    wsc = np.asarray(w_oihw, np.float32)[:, :, 0, 0].T          # (cin, cout)
    M = np.zeros((w_in * cin_p, w_out * cout_p), np.float32)
    for wo in range(w_out):
        iw = stride * wo
        M[iw * cin_p:iw * cin_p + cin, wo * cout_p:wo * cout_p + cout] = wsc
    return jnp.asarray(M, jnp.bfloat16)


def prepare_block(params, in_planes, out_planes, stride, H, W, batch_tile=8):
    """Precompute (once) all folded/packed operands + static sizes."""
    assert stride in (1, 2), "WideResNet BasicBlock uses stride 1 or 2"
    Cin, Cout = in_planes, out_planes
    equal = Cin == Cout
    if equal:
        assert stride == 1, "identity shortcut requires stride 1"
    Ho = (H - 1) // stride + 1
    Wo = (W - 1) // stride + 1

    Cout_p = _lane_pad(Cout, Wo)        # lane-dense output (multiple of 128)
    Cin_p = Cout_p if equal else Cin    # identity residual must share the layout
    Hk = 2 * Ho if stride == 2 else H   # stride-2 inputs arrive row-deinterleaved

    s1, b1 = _fold_bn(params["bn1_gamma"], params["bn1_beta"],
                      params["bn1_mean"], params["bn1_var"])
    s2, b2 = _fold_bn(params["bn2_gamma"], params["bn2_beta"],
                      params["bn2_mean"], params["bn2_var"])

    consts = {
        "equal": equal, "stride": stride, "Bt": batch_tile,
        "H": H, "W": W, "Ho": Ho, "Wo": Wo, "Hk": Hk,
        "Cin": Cin, "Cout": Cout, "Cin_p": Cin_p, "Cout_p": Cout_p,
        "s1": _tile_lanes(s1, Cin, Cin_p, W),
        "b1": _tile_lanes(b1, Cin, Cin_p, W),
        "s2": _tile_lanes(s2, Cout, Cout_p, Wo),
        "b2": _tile_lanes(b2, Cout, Cout_p, Wo),
        "W1": _stacked_conv_w(params["conv1_w"], stride, W, Wo,
                              Cin, Cin_p, Cout, Cout_p),
        "W2": _stacked_conv_w(params["conv2_w"], 1, Wo, Wo,
                              Cout, Cout_p, Cout, Cout_p),
    }
    if not equal:
        consts["Wsc"] = _shortcut_w(params["convsc_w"], stride, W, Wo,
                                    Cin, Cin_p, Cout, Cout_p)
    return consts


# --------------------------------- forward -----------------------------------

def basic_block_forward_slab(x_slab, consts):
    """Fused forward on slab-layout activations.

    x_slab: (N, Hk, W*Cin_p) bf16   ->   (N, Ho, Wo*Cout_p) bf16
    Production entry point: chained blocks stay in this layout, so no NCHW
    transposes and no f32 round-trips hit HBM between blocks.
    """
    c = consts
    W, Ho, Wo = c["W"], c["Ho"], c["Wo"]
    Cin_p, Cout_p = c["Cin_p"], c["Cout_p"]
    Hk, equal = c["Hk"], c["equal"]
    WCi, WCo = W * Cin_p, Wo * Cout_p
    N = x_slab.shape[0]

    Bt = max(1, min(c["Bt"], N))          # batch tile per grid step
    Npad = pl.cdiv(N, Bt) * Bt
    if Npad != N:
        x_slab = jnp.pad(x_slab, ((0, Npad - N), (0, 0), (0, 0)))

    cfg = {"equal": equal, "stride": c["stride"], "Bt": Bt,
           "Ho": Ho, "H": c["H"], "WCi": WCi, "WCo": WCo}

    operands = [x_slab, c["s1"], c["b1"], c["s2"], c["b2"], c["W1"], c["W2"]]
    in_specs = [
        pl.BlockSpec((Bt, Hk, WCi), lambda n: (n, 0, 0)),     # x (batch tile)
        pl.BlockSpec((1, WCi), lambda n: (0, 0)),             # bn1 scale
        pl.BlockSpec((1, WCi), lambda n: (0, 0)),             # bn1 shift
        pl.BlockSpec((1, WCo), lambda n: (0, 0)),             # bn2 scale
        pl.BlockSpec((1, WCo), lambda n: (0, 0)),             # bn2 shift
        pl.BlockSpec((3 * WCi, WCo), lambda n: (0, 0)),       # conv1 (K-stacked)
        pl.BlockSpec((3 * WCo, WCo), lambda n: (0, 0)),       # conv2 (K-stacked)
    ]
    if not equal:
        operands.append(c["Wsc"])
        in_specs.append(pl.BlockSpec((WCi, WCo), lambda n: (0, 0)))

    out = pl.pallas_call(
        functools.partial(_block_kernel, cfg),
        out_shape=jax.ShapeDtypeStruct((Npad, Ho, WCo), jnp.bfloat16),
        grid=(Npad // Bt,),
        in_specs=in_specs,
        out_specs=pl.BlockSpec((Bt, Ho, WCo), lambda n: (n, 0, 0)),
        scratch_shapes=[pltpu.VMEM((Bt, Ho, 3 * WCi), jnp.bfloat16),
                        pltpu.VMEM((Bt, Ho, 3 * WCo), jnp.bfloat16)],
        compiler_params=pltpu.CompilerParams(
            dimension_semantics=("parallel",)),   # megacore over batch tiles
    )(*operands)
    return out[:N]


def pack_input(x_nchw, consts):
    """NCHW f32 -> bf16 slab (N, Hk, W*Cin_p).  For stride-2 blocks the rows are
    deinterleaved to [even | odd] inside the same XLA layout copy, so the kernel
    only ever needs unit-stride row shifts."""
    c = consts
    H, W, Ho = c["H"], c["W"], c["Ho"]
    Cin, Cin_p = c["Cin"], c["Cin_p"]
    N = x_nchw.shape[0]
    xh = jnp.transpose(x_nchw, (0, 2, 3, 1)).astype(jnp.bfloat16)   # NHWC
    if Cin_p != Cin:
        xh = jnp.pad(xh, ((0, 0), (0, 0), (0, 0), (0, Cin_p - Cin)))
    if c["stride"] == 2:
        ev, od = xh[:, 0::2], xh[:, 1::2]
        if od.shape[1] < Ho:                    # odd H: pad the odd-row slab
            od = jnp.pad(od, ((0, 0), (0, Ho - od.shape[1]), (0, 0), (0, 0)))
        xh = jnp.concatenate([ev, od], axis=1)
    return xh.reshape(N, c["Hk"], W * Cin_p)


def unpack_output(out_slab, consts):
    """Slab (N, Ho, Wo*Cout_p) -> NCHW f32 (drops channel padding)."""
    c = consts
    N = out_slab.shape[0]
    out = out_slab.reshape(N, c["Ho"], c["Wo"], c["Cout_p"])[..., :c["Cout"]]
    return jnp.transpose(out, (0, 3, 1, 2)).astype(jnp.float32)


def basic_block_forward(x_nchw, consts):
    """PyTorch-interface adapter (NCHW in / NCHW out) around the slab core."""
    return unpack_output(
        basic_block_forward_slab(pack_input(x_nchw, consts), consts), consts)


# ------------------------------- parameters ----------------------------------

def init_params(key, in_planes, out_planes):
    ks = jax.random.split(key, 8)

    def conv_w(k, cout, cin, kh, kw):
        fan = cin * kh * kw
        return (jax.random.normal(k, (cout, cin, kh, kw), jnp.float32)
                * math.sqrt(2.0 / fan))

    p = {
        "bn1_gamma": 1.0 + 0.1 * jax.random.normal(ks[0], (in_planes,), jnp.float32),
        "bn1_beta": 0.1 * jax.random.normal(ks[1], (in_planes,), jnp.float32),
        "bn1_mean": 0.1 * jax.random.normal(ks[2], (in_planes,), jnp.float32),
        "bn1_var": 1.0 + 0.1 * jax.random.uniform(ks[3], (in_planes,), jnp.float32),
        "conv1_w": conv_w(ks[4], out_planes, in_planes, 3, 3),
        "bn2_gamma": 1.0 + 0.1 * jax.random.normal(ks[5], (out_planes,), jnp.float32),
        "bn2_beta": 0.1 * jax.random.normal(ks[6], (out_planes,), jnp.float32),
        "bn2_mean": 0.05 * jax.random.normal(jax.random.fold_in(key, 7),
                                             (out_planes,), jnp.float32),
        "bn2_var": 1.0 + 0.1 * jax.random.uniform(ks[7], (out_planes,), jnp.float32),
        "conv2_w": conv_w(jax.random.fold_in(key, 8), out_planes, out_planes, 3, 3),
    }
    if in_planes != out_planes:
        p["convsc_w"] = conv_w(jax.random.fold_in(key, 99), out_planes, in_planes, 1, 1)
    return p


# ----------------------------- pure-JAX reference ----------------------------

def reference_forward(x, params, in_planes, out_planes, stride):
    def bn(y, g, b, m, v):
        g, b, m, v = (t[None, :, None, None] for t in (g, b, m, v))
        return (y - m) / jnp.sqrt(v + _EPS) * g + b

    def conv(y, w, s, p):
        return jax.lax.conv_general_dilated(
            y, w, (s, s), [(p, p), (p, p)],
            dimension_numbers=("NCHW", "OIHW", "NCHW"))

    equal = in_planes == out_planes
    act = jax.nn.relu(bn(x, params["bn1_gamma"], params["bn1_beta"],
                         params["bn1_mean"], params["bn1_var"]))
    out = conv(act, params["conv1_w"], stride, 1)
    out = jax.nn.relu(bn(out, params["bn2_gamma"], params["bn2_beta"],
                         params["bn2_mean"], params["bn2_var"]))
    out = conv(out, params["conv2_w"], 1, 1)
    if equal:
        return x + out
    return conv(act, params["convsc_w"], stride, 0) + out


def _rel_err(a, b):
    return float(jnp.linalg.norm((a - b).astype(jnp.float32)) /
                 (jnp.linalg.norm(b.astype(jnp.float32)) + 1e-12))


# ------------------------------------ main -----------------------------------

if __name__ == "__main__":
    key = jax.random.PRNGKey(0)
    kx, kx2, kp1, kp2 = jax.random.split(key, 4)

    # Case 1: in_planes != out_planes, stride=2 (1x1 conv shortcut path).
    x = jax.random.normal(kx, (2, 4, 16, 16), jnp.float32)
    p = init_params(kp1, 4, 8)
    consts = prepare_block(p, 4, 8, stride=2, H=16, W=16)     # built once
    y = jax.block_until_ready(basic_block_forward(x, consts))
    y_ref = reference_forward(x, p, 4, 8, stride=2)
    assert y.shape == (2, 8, 8, 8), y.shape
    # bf16 activations/weights at HBM + bf16 MXU operands (f32 accumulation):
    # relative error stays well below 2%.
    e1 = _rel_err(y, y_ref)
    assert e1 < 2e-2, f"mismatch (shortcut path): {e1}"

    # Case 2: in_planes == out_planes, stride=1 (identity shortcut path).
    x2 = jax.random.normal(kx2, (2, 8, 16, 16), jnp.float32)
    p2 = init_params(kp2, 8, 8)
    consts2 = prepare_block(p2, 8, 8, stride=1, H=16, W=16)
    y2 = jax.block_until_ready(basic_block_forward(x2, consts2))
    y2_ref = reference_forward(x2, p2, 8, 8, stride=1)
    assert y2.shape == (2, 8, 16, 16), y2.shape
    e2 = _rel_err(y2, y2_ref)
    assert e2 < 2e-2, f"mismatch (identity path): {e2}"

    print("KERNEL_OK")
</pallas_src>

<mosaic_0001>
module attributes {stable_mosaic.version = 11 : i64} {
  func.func @_block_kernel(%arg0: i32, %arg1: memref<2x16x64xbf16, #tpu.memory_space<vmem>>, %arg2: memref<1x64xf32, #tpu.memory_space<vmem>>, %arg3: memref<1x64xf32, #tpu.memory_space<vmem>>, %arg4: memref<1x128xf32, #tpu.memory_space<vmem>>, %arg5: memref<1x128xf32, #tpu.memory_space<vmem>>, %arg6: memref<192x128xbf16, #tpu.memory_space<vmem>>, %arg7: memref<384x128xbf16, #tpu.memory_space<vmem>>, %arg8: memref<64x128xbf16, #tpu.memory_space<vmem>>, %arg9: memref<2x8x128xbf16, #tpu.memory_space<vmem>>, %arg10: memref<2x8x192xbf16, #tpu.memory_space<vmem>>, %arg11: memref<2x8x384xbf16, #tpu.memory_space<vmem>>) attributes {dimension_semantics = [#tpu.dimension_semantics<parallel>], iteration_bounds = array<i64: 1>, scalar_prefetch = 0 : i64, scratch_operands = 2 : i64, tpu.core_type = #tpu.core_type<tc>, window_params = [{transform_indices = @transform_0, window_bounds = array<i64: 2, 16, 64>}, {pipeline_mode = #tpu.pipeline_mode<synchronous>, transform_indices = @transform_1, window_bounds = array<i64: 1, 64>}, {pipeline_mode = #tpu.pipeline_mode<synchronous>, transform_indices = @transform_2, window_bounds = array<i64: 1, 64>}, {pipeline_mode = #tpu.pipeline_mode<synchronous>, transform_indices = @transform_3, window_bounds = array<i64: 1, 128>}, {pipeline_mode = #tpu.pipeline_mode<synchronous>, transform_indices = @transform_4, window_bounds = array<i64: 1, 128>}, {pipeline_mode = #tpu.pipeline_mode<synchronous>, transform_indices = @transform_5, window_bounds = array<i64: 192, 128>}, {pipeline_mode = #tpu.pipeline_mode<synchronous>, transform_indices = @transform_6, window_bounds = array<i64: 384, 128>}, {pipeline_mode = #tpu.pipeline_mode<synchronous>, transform_indices = @transform_7, window_bounds = array<i64: 64, 128>}, {transform_indices = @transform_8, window_bounds = array<i64: 2, 8, 128>}]} {
    %c0 = arith.constant 0 : index
    %c0_0 = arith.constant 0 : index
    %c0_1 = arith.constant 0 : index
    %0 = vector.load %arg1[%c0, %c0_0, %c0_1] : memref<2x16x64xbf16, #tpu.memory_space<vmem>>, vector<2x16x64xbf16>
    %1 = arith.extf %0 : vector<2x16x64xbf16> to vector<2x16x64xf32>
    %c0_2 = arith.constant 0 : index
    %c0_3 = arith.constant 0 : index
    %2 = vector.load %arg2[%c0_2, %c0_3] : memref<1x64xf32, #tpu.memory_space<vmem>>, vector<1x64xf32>
    %3 = vector.shape_cast %2 : vector<1x64xf32> to vector<1x1x64xf32>
    %4 = vector.broadcast %3 : vector<1x1x64xf32> to vector<2x16x64xf32>
    %5 = arith.mulf %1, %4 : vector<2x16x64xf32>
    %c0_4 = arith.constant 0 : index
    %c0_5 = arith.constant 0 : index
    %6 = vector.load %arg3[%c0_4, %c0_5] : memref<1x64xf32, #tpu.memory_space<vmem>>, vector<1x64xf32>
    %7 = vector.shape_cast %6 : vector<1x64xf32> to vector<1x1x64xf32>
    %8 = vector.broadcast %7 : vector<1x1x64xf32> to vector<2x16x64xf32>
    %9 = arith.addf %5, %8 : vector<2x16x64xf32>
    %cst = arith.constant 0.000000e+00 : f32
    %10 = vector.broadcast %cst : f32 to vector<2x16x64xf32>
    %11 = arith.maximumf %9, %10 : vector<2x16x64xf32>
    %12 = arith.truncf %11 : vector<2x16x64xf32> to vector<2x16x64xbf16>
    %cst_6 = arith.constant 0.000000e+00 : bf16
    %13 = vector.broadcast %cst_6 : bf16 to vector<2x8x192xbf16>
    %c0_7 = arith.constant 0 : index
    %c0_8 = arith.constant 0 : index
    %c0_9 = arith.constant 0 : index
    %14 = vector.load %arg10[%c0_7, %c0_8, %c0_9] : memref<2x8x192xbf16, #tpu.memory_space<vmem>>, vector<2x8x192xbf16>
    tpu.vector_store %arg10[%c0_7, %c0_8, %c0_9], %13 {strides = array<i32>} : memref<2x8x192xbf16, #tpu.memory_space<vmem>>, vector<2x8x192xbf16>,
    %15 = vector.extract_strided_slice %12 {offsets = [0, 0, 0], sizes = [2, 8, 64], strides = [1, 1, 1]} : vector<2x16x64xbf16> to vector<2x8x64xbf16>
    %16 = vector.extract_strided_slice %12 {offsets = [0, 8, 0], sizes = [2, 8, 64], strides = [1, 1, 1]} : vector<2x16x64xbf16> to vector<2x8x64xbf16>
    %17 = vector.extract_strided_slice %16 {offsets = [0, 0, 0], sizes = [2, 7, 64], strides = [1, 1, 1]} : vector<2x8x64xbf16> to vector<2x7x64xbf16>
    %c0_10 = arith.constant 0 : index
    %c1 = arith.constant 1 : index
    %c0_11 = arith.constant 0 : index
    %18 = vector.load %arg10[%c0_10, %c1, %c0_11] : memref<2x8x192xbf16, #tpu.memory_space<vmem>>, vector<2x7x64xbf16>
    tpu.vector_store %arg10[%c0_10, %c1, %c0_11], %17 {strides = array<i32>} : memref<2x8x192xbf16, #tpu.memory_space<vmem>>, vector<2x7x64xbf16>,
    %c0_12 = arith.constant 0 : index
    %c0_13 = arith.constant 0 : index
    %c64 = arith.constant 64 : index
    %19 = vector.load %arg10[%c0_12, %c0_13, %c64] : memref<2x8x192xbf16, #tpu.memory_space<vmem>>, vector<2x8x64xbf16>
    tpu.vector_store %arg10[%c0_12, %c0_13, %c64], %15 {strides = array<i32>} : memref<2x8x192xbf16, #tpu.memory_space<vmem>>, vector<2x8x64xbf16>,
    %c0_14 = arith.constant 0 : index
    %c0_15 = arith.constant 0 : index
    %c128 = arith.constant 128 : index
    %20 = vector.load %arg10[%c0_14, %c0_15, %c128] : memref<2x8x192xbf16, #tpu.memory_space<vmem>>, vector<2x8x64xbf16>
    tpu.vector_store %arg10[%c0_14, %c0_15, %c128], %16 {strides = array<i32>} : memref<2x8x192xbf16, #tpu.memory_space<vmem>>, vector<2x8x64xbf16>,
    %c0_16 = arith.constant 0 : index
    %c0_17 = arith.constant 0 : index
    %c0_18 = arith.constant 0 : index
    %21 = vector.load %arg10[%c0_16, %c0_17, %c0_18] : memref<2x8x192xbf16, #tpu.memory_space<vmem>>, vector<2x8x192xbf16>
    %22 = vector.shape_cast %21 : vector<2x8x192xbf16> to vector<16x192xbf16>
    %c0_19 = arith.constant 0 : index
    %c0_20 = arith.constant 0 : index
    %23 = vector.load %arg6[%c0_19, %c0_20] : memref<192x128xbf16, #tpu.memory_space<vmem>>, vector<192x128xbf16>
    %cst_21 = arith.constant dense<0.000000e+00> : vector<16x128xf32>
    %24 = tpu.matmul %22, %23, %cst_21 {dimension_numbers = #tpu.dot_dimension_numbers<[1], [0], [0], [1], [0, 0, 1, 1], [], []>} : vector<16x192xbf16>, vector<192x128xbf16>, vector<16x128xf32> -> vector<16x128xf32>
    %c0_22 = arith.constant 0 : index
    %c0_23 = arith.constant 0 : index
    %25 = vector.load %arg4[%c0_22, %c0_23] : memref<1x128xf32, #tpu.memory_space<vmem>>, vector<1x128xf32>
    %26 = vector.broadcast %25 : vector<1x128xf32> to vector<16x128xf32>
    %27 = arith.mulf %24, %26 : vector<16x128xf32>
    %c0_24 = arith.constant 0 : index
    %c0_25 = arith.constant 0 : index
    %28 = vector.load %arg5[%c0_24, %c0_25] : memref<1x128xf32, #tpu.memory_space<vmem>>, vector<1x128xf32>
    %29 = vector.broadcast %28 : vector<1x128xf32> to vector<16x128xf32>
    %30 = arith.addf %27, %29 : vector<16x128xf32>
    %cst_26 = arith.constant 0.000000e+00 : f32
    %31 = vector.broadcast %cst_26 : f32 to vector<16x128xf32>
    %32 = arith.maximumf %30, %31 : vector<16x128xf32>
    %33 = arith.truncf %32 : vector<16x128xf32> to vector<16x128xbf16>
    %34 = vector.shape_cast %33 : vector<16x128xbf16> to vector<2x8x128xbf16>
    %cst_27 = arith.constant 0.000000e+00 : bf16
    %35 = vector.broadcast %cst_27 : bf16 to vector<2x8x384xbf16>
    %c0_28 = arith.constant 0 : index
    %c0_29 = arith.constant 0 : index
    %c0_30 = arith.constant 0 : index
    %36 = vector.load %arg11[%c0_28, %c0_29, %c0_30] : memref<2x8x384xbf16, #tpu.memory_space<vmem>>, vector<2x8x384xbf16>
    tpu.vector_store %arg11[%c0_28, %c0_29, %c0_30], %35 {strides = array<i32>} : memref<2x8x384xbf16, #tpu.memory_space<vmem>>, vector<2x8x384xbf16>,
    %37 = vector.extract_strided_slice %34 {offsets = [0, 0, 0], sizes = [2, 7, 128], strides = [1, 1, 1]} : vector<2x8x128xbf16> to vector<2x7x128xbf16>
    %c0_31 = arith.constant 0 : index
    %c1_32 = arith.constant 1 : index
    %c0_33 = arith.constant 0 : index
    %38 = vector.load %arg11[%c0_31, %c1_32, %c0_33] : memref<2x8x384xbf16, #tpu.memory_space<vmem>>, vector<2x7x128xbf16>
    tpu.vector_store %arg11[%c0_31, %c1_32, %c0_33], %37 {strides = array<i32>} : memref<2x8x384xbf16, #tpu.memory_space<vmem>>, vector<2x7x128xbf16>,
    %39 = vector.extract_strided_slice %34 {offsets = [0, 1, 0], sizes = [2, 7, 128], strides = [1, 1, 1]} : vector<2x8x128xbf16> to vector<2x7x128xbf16>
    %c0_34 = arith.constant 0 : index
    %c0_35 = arith.constant 0 : index
    %c256 = arith.constant 256 : index
    %40 = vector.load %arg11[%c0_34, %c0_35, %c256] : memref<2x8x384xbf16, #tpu.memory_space<vmem>>, vector<2x7x128xbf16>
    tpu.vector_store %arg11[%c0_34, %c0_35, %c256], %39 {strides = array<i32>} : memref<2x8x384xbf16, #tpu.memory_space<vmem>>, vector<2x7x128xbf16>,
    %c0_36 = arith.constant 0 : index
    %c0_37 = arith.constant 0 : index
    %c128_38 = arith.constant 128 : index
    %41 = vector.load %arg11[%c0_36, %c0_37, %c128_38] : memref<2x8x384xbf16, #tpu.memory_space<vmem>>, vector<2x8x128xbf16>
    tpu.vector_store %arg11[%c0_36, %c0_37, %c128_38], %34 {strides = array<i32>} : memref<2x8x384xbf16, #tpu.memory_space<vmem>>, vector<2x8x128xbf16>,
    %c0_39 = arith.constant 0 : index
    %c0_40 = arith.constant 0 : index
    %c0_41 = arith.constant 0 : index
    %42 = vector.load %arg11[%c0_39, %c0_40, %c0_41] : memref<2x8x384xbf16, #tpu.memory_space<vmem>>, vector<2x8x384xbf16>
    %43 = vector.shape_cast %42 : vector<2x8x384xbf16> to vector<16x384xbf16>
    %c0_42 = arith.constant 0 : index
    %c0_43 = arith.constant 0 : index
    %44 = vector.load %arg7[%c0_42, %c0_43] : memref<384x128xbf16, #tpu.memory_space<vmem>>, vector<384x128xbf16>
    %cst_44 = arith.constant dense<0.000000e+00> : vector<16x128xf32>
    %45 = tpu.matmul %43, %44, %cst_44 {dimension_numbers = #tpu.dot_dimension_numbers<[1], [0], [0], [1], [0, 0, 1, 1], [], []>} : vector<16x384xbf16>, vector<384x128xbf16>, vector<16x128xf32> -> vector<16x128xf32>
    %46 = vector.shape_cast %15 : vector<2x8x64xbf16> to vector<16x64xbf16>
    %c0_45 = arith.constant 0 : index
    %c0_46 = arith.constant 0 : index
    %47 = vector.load %arg8[%c0_45, %c0_46] : memref<64x128xbf16, #tpu.memory_space<vmem>>, vector<64x128xbf16>
    %cst_47 = arith.constant dense<0.000000e+00> : vector<16x128xf32>
    %48 = tpu.matmul %46, %47, %cst_47 {dimension_numbers = #tpu.dot_dimension_numbers<[1], [0], [0], [1], [0, 0, 1, 1], [], []>} : vector<16x64xbf16>, vector<64x128xbf16>, vector<16x128xf32> -> vector<16x128xf32>
    %49 = arith.addf %45, %48 : vector<16x128xf32>
    %50 = vector.shape_cast %49 : vector<16x128xf32> to vector<2x8x128xf32>
    %51 = arith.truncf %50 : vector<2x8x128xf32> to vector<2x8x128xbf16>
    %c0_48 = arith.constant 0 : index
    %c0_49 = arith.constant 0 : index
    %c0_50 = arith.constant 0 : index
    %52 = vector.load %arg9[%c0_48, %c0_49, %c0_50] : memref<2x8x128xbf16, #tpu.memory_space<vmem>>, vector<2x8x128xbf16>
    tpu.vector_store %arg9[%c0_48, %c0_49, %c0_50], %51 {strides = array<i32>} : memref<2x8x128xbf16, #tpu.memory_space<vmem>>, vector<2x8x128xbf16>,
    return
  }
  func.func @transform_0(%arg0: i32) -> (i32, i32, i32) {
    %c0_i32 = arith.constant 0 : i32
    %c0_i32_0 = arith.constant 0 : i32
    %c0_i32_1 = arith.constant 0 : i32
    return %arg0, %c0_i32, %c0_i32_0 : i32, i32, i32
  }
  func.func @transform_1(%arg0: i32) -> (i32, i32) {
    %c0_i32 = arith.constant 0 : i32
    %c0_i32_0 = arith.constant 0 : i32
    %c0_i32_1 = arith.constant 0 : i32
    return %c0_i32, %c0_i32_0 : i32, i32
  }
  func.func @transform_2(%arg0: i32) -> (i32, i32) {
    %c0_i32 = arith.constant 0 : i32
    %c0_i32_0 = arith.constant 0 : i32
    %c0_i32_1 = arith.constant 0 : i32
    return %c0_i32, %c0_i32_0 : i32, i32
  }
  func.func @transform_3(%arg0: i32) -> (i32, i32) {
    %c0_i32 = arith.constant 0 : i32
    %c0_i32_0 = arith.constant 0 : i32
    %c0_i32_1 = arith.constant 0 : i32
    return %c0_i32, %c0_i32_0 : i32, i32
  }
  func.func @transform_4(%arg0: i32) -> (i32, i32) {
    %c0_i32 = arith.constant 0 : i32
    %c0_i32_0 = arith.constant 0 : i32
    %c0_i32_1 = arith.constant 0 : i32
    return %c0_i32, %c0_i32_0 : i32, i32
  }
  func.func @transform_5(%arg0: i32) -> (i32, i32) {
    %c0_i32 = arith.constant 0 : i32
    %c0_i32_0 = arith.constant 0 : i32
    %c0_i32_1 = arith.constant 0 : i32
    return %c0_i32, %c0_i32_0 : i32, i32
  }
  func.func @transform_6(%arg0: i32) -> (i32, i32) {
    %c0_i32 = arith.constant 0 : i32
    %c0_i32_0 = arith.constant 0 : i32
    %c0_i32_1 = arith.constant 0 : i32
    return %c0_i32, %c0_i32_0 : i32, i32
  }
  func.func @transform_7(%arg0: i32) -> (i32, i32) {
    %c0_i32 = arith.constant 0 : i32
    %c0_i32_0 = arith.constant 0 : i32
    %c0_i32_1 = arith.constant 0 : i32
    return %c0_i32, %c0_i32_0 : i32, i32
  }
  func.func @transform_8(%arg0: i32) -> (i32, i32, i32) {
    %c0_i32 = arith.constant 0 : i32
    %c0_i32_0 = arith.constant 0 : i32
    %c0_i32_1 = arith.constant 0 : i32
    return %arg0, %c0_i32, %c0_i32_0 : i32, i32, i32
  }
}

</mosaic_0001>

<bundles_post_ra>
// kernel: tpu_custom_call.1
= control target key start
LH: loop header
LB: loop body
LE: loop exit
PB: predicated region body
PF: predicated region fallthrough
CT: control target
= control target key end

     0   :  { %13 = vsyncpa [#allocation5], 0  ;;  %s1363_s0 = inlined_call_operand.hbm [shape: bf16[2,16,64], index: 0, kind: input, shape index: {}]   ;;  %s1364_s1 = inlined_call_operand.vmem [shape: f32[1,64], index: 1, kind: input, shape index: {}]   ;;  %s1365_s2 = inlined_call_operand.vmem [shape: f32[1,64], index: 2, kind: input, shape index: {}]   ;;  %s1366_s3 = inlined_call_operand.vmem [shape: f32[1,128], index: 3, kind: input, shape index: {}]   ;;  %s1367_s4 = inlined_call_operand.vmem [shape: f32[1,128], index: 4, kind: input, shape index: {}]   ;;  %s1368_s5 = inlined_call_operand.hbm [shape: bf16[192,128], index: 5, kind: input, shape index: {}]   ;;  %s1369_s6 = inlined_call_operand.hbm [shape: bf16[384,128], index: 6, kind: input, shape index: {}]   ;;  %s1370_s7 = inlined_call_operand.hbm [shape: bf16[64,128], index: 7, kind: input, shape index: {}]   ;;  %s1371_s8 = inlined_call_operand.hbm [shape: bf16[2,8,128], index: 8, kind: output, shape index: {}]  }
   0x1   :  { %14 = vsyncpa [#allocation8], 0 }
   0x2   :  { %15 = vsyncpa [#allocation11], 0 }
   0x3   :  { %16 = vsyncpa [#allocation6], 0  ;;  %s1124_s27 = smov [#allocation7]   ;;  %s1125_s29 = smov [#allocation4]  }
   0x4   :  { %s42_s28 = sshll.u32 %s1124_s27, 4  ;;  %s22_s30 = sshll.u32 %s1125_s29, 4  ;;  %s43_s28 = int_to_ptr.vmem [resolvable:$true] %s42_s28  ;;  %s1179_s30 = int_to_ptr.vmem [resolvable:$true] %s22_s30 }
   0x5   :  { %s1006_s11 = scalar_lea.hbm %s1368_s5, 1536 }
   0x6   :  { %p1007_p0 = scmp.ne.s32.totalorder %s1368_s5, %s1006_s11  ;;  %p1010_p1 = scmp.lt.u32.totalorder %s1006_s11, %s1368_s5 }
   0x8   :  { %p1012_p2 = pnand %p1010_p1, %p1007_p0 }
   0xa   :  { %1015 = shalt.err (!%p1012_p2)
}
   0xb   :  { %s1016_s16 = scalar_lea.vmem %s43_s28, 1536  ;;  %p1021_p4 = scmp.lt.s32.totalorder %s43_s28, %s43_s28 }
   0xc   :  { %p1017_p3 = scmp.ne.s32.totalorder %s43_s28, %s1016_s16  ;;  %p1022_p5 = scmp.lt.s32.totalorder %s1016_s16, %s1016_s16 }
   0xe   :  { %p1023_p6 = por %p1022_p5, %p1021_p4 }
  0x10   :  { %p1024_p7 = pnand %p1023_p6, %p1017_p3 }
  0x12   :  { %1027 = shalt.err (!%p1024_p7)
}
  0x13   :  { %s1126_s17 = smov 64   ;;  %s1127_s18 = smov 4  }
  0x14   :  { %48 = dma.hbm_to_vmem [thread:$0]  %s1368_s5, 1536, %s43_s28, [#allocation8], %s1126_s17, %s1126_s17, %s1127_s18  }
  0x15   :  { %s1028_s23 = scalar_lea.hbm %s1363_s0, 256 }
  0x16   :  { %p1029_p8 = scmp.ne.s32.totalorder %s1363_s0, %s1028_s23  ;;  %p1032_p9 = scmp.lt.u32.totalorder %s1028_s23, %s1363_s0 }
  0x18   :  { %p1034_p10 = pnand %p1032_p9, %p1029_p8 }
  0x1a   :  { %1037 = shalt.err (!%p1034_p10)
}
  0x1b   :  { %s1038_s29 = scalar_lea.vmem %s1179_s30, 256  ;;  %p1043_p12 = scmp.lt.s32.totalorder %s1179_s30, %s1179_s30 }
  0x1c   :  { %p1039_p11 = scmp.ne.s32.totalorder %s1179_s30, %s1038_s29  ;;  %p1044_p13 = scmp.lt.s32.totalorder %s1038_s29, %s1038_s29 }
  0x1e   :  { %p1045_p0 = por %p1044_p13, %p1043_p12 }
  0x20   :  { %p1046_p1 = pnand %p1045_p0, %p1039_p11 }
  0x22   :  { %1049 = shalt.err (!%p1046_p1)
}
  0x23   :  { %28 = dma.hbm_to_vmem [thread:$0]  %s1363_s0, 256, %s1179_s30, [#allocation5], %s1126_s17, %s1126_s17, %s1127_s18  }
  0x24   :  { %s1128_s9 = smov [#allocation9]   ;;  %s1129_s11 = smov [#allocation10]  }
  0x25   :  { %s54_s10 = sshll.u32 %s1128_s9, 4  ;;  %s66_s12 = sshll.u32 %s1129_s11, 4  ;;  %s55_s10 = int_to_ptr.vmem [resolvable:$true] %s54_s10  ;;  %s1216_s12 = int_to_ptr.vmem [resolvable:$true] %s66_s12 }
  0x26   :  { %s1050_s15 = scalar_lea.hbm %s1369_s6, 3072 }
  0x27   :  { %p1051_p2 = scmp.ne.s32.totalorder %s1369_s6, %s1050_s15  ;;  %p1054_p3 = scmp.lt.u32.totalorder %s1050_s15, %s1369_s6 }
  0x29   :  { %p1056_p4 = pnand %p1054_p3, %p1051_p2 }
  0x2b   :  { %1059 = shalt.err (!%p1056_p4)
}
  0x2c   :  { %s1060_s0 = scalar_lea.vmem %s55_s10, 3072  ;;  %p1065_p6 = scmp.lt.s32.totalorder %s55_s10, %s55_s10 }
  0x2d   :  { %p1061_p5 = scmp.ne.s32.totalorder %s55_s10, %s1060_s0  ;;  %p1066_p7 = scmp.lt.s32.totalorder %s1060_s0, %s1060_s0 }
  0x2f   :  { %p1067_p8 = por %p1066_p7, %p1065_p6 }
  0x31   :  { %p1068_p9 = pnand %p1067_p8, %p1061_p5 }
  0x33   :  { %1071 = shalt.err (!%p1068_p9)
}
  0x34   :  { %60 = dma.hbm_to_vmem [thread:$0]  %s1369_s6, 3072, %s55_s10, [#allocation8], %s1126_s17, %s1126_s17, %s1127_s18  }
  0x35   :  { %s1072_s25 = scalar_lea.hbm %s1370_s7, 512 }
  0x36   :  { %p1073_p10 = scmp.ne.s32.totalorder %s1370_s7, %s1072_s25  ;;  %p1076_p11 = scmp.lt.u32.totalorder %s1072_s25, %s1370_s7 }
  0x38   :  { %p1078_p12 = pnand %p1076_p11, %p1073_p10 }
  0x3a   :  { %1081 = shalt.err (!%p1078_p12)
}
  0x3b   :  { %s1082_s28 = scalar_lea.vmem %s1216_s12, 512  ;;  %p1087_p0 = scmp.lt.s32.totalorder %s1216_s12, %s1216_s12 }
  0x3c   :  { %p1083_p13 = scmp.ne.s32.totalorder %s1216_s12, %s1082_s28  ;;  %p1088_p1 = scmp.lt.s32.totalorder %s1082_s28, %s1082_s28 }
  0x3e   :  { %p1089_p2 = por %p1088_p1, %p1087_p0 }
  0x40   :  { %p1090_p3 = pnand %p1089_p2, %p1083_p13 }
  0x42   :  { %1093 = shalt.err (!%p1090_p3)
}
  0x43   :  { %72 = dma.hbm_to_vmem [thread:$0]  %s1370_s7, 512, %s1216_s12, [#allocation11], %s1126_s17, %s1126_s17, %s1127_s18  }
  0x44   :  { %1116 = dma.done.wait [#allocation5], 256  }
  0x45   :  { %1117 = vsyncadd [#allocation5], 4294967040 }
  0x46   :  { %1118 = dma.done.wait [#allocation8], 4608  }
  0x47   :  { %1119 = vsyncadd [#allocation8], 4294962688 }
  0x48   :  { %1120 = dma.done.wait [#allocation11], 512  }
  0x49   :  { %1121 = vsyncadd [#allocation11], 4294966784  ;;  %vm122_vm0 = vcmask 1043456   ;;  %vm123_vm1 = vcmask 523268   ;;  %v1130_v0 = vmov 0   ;;  %v864_v1 = vld [vmem:[#allocation4] sm:$0xff]  }
  0x4a   :  { %287 = vmatprep.subr.bf16.mxu0 %v1130_v0  ;;  %356 = vst [vmem:[#allocation3] sm:$0xff] %v1130_v0  ;;  %357 = vst [vmem:[#allocation3 + $0x8] sm:$0xf] %v1130_v0  ;;  %v798_v2 = vld [vmem:[%s1364_s1] ss:$0 sm:$0xff]  ;;  %v865_v4 = vunpack.c.l.bf16 %v864_v1  ;;  %v866_v5 = vunpack.c.h.bf16 %v864_v1  ;;  %v876_v6 = vld [vmem:[#allocation4 + $0x8] sm:$0xff]  }
  0x4b   :  { %358 = vst [vmem:[#allocation3 + $0xc] sm:$0xff] %v1130_v0  ;;  %359 = vst [vmem:[#allocation3 + $0x14] sm:$0xf] %v1130_v0  ;;  %v799_v3 = vld [vmem:[%s1365_s2] ss:$0 sm:$0xff]  ;;  %v869_v7 = vunpack.c.l.bf16 %v876_v6  ;;  %v870_v8 = vunpack.c.h.bf16 %v876_v6  ;;  %v959_v9 = vld [vmem:[#allocation7] sm:$0xff]  }
  0x4c   :  { %vm124_vm2 = vmor %vm123_vm1, %vm122_vm0  ;;  %v101_v10 = vmul.f32 %v865_v4, %v798_v2  ;;  %v102_v11 = vmul.f32 %v866_v5, %v798_v2  ;;  %288 = vmatpush1.bf16.msra.mxu0 %v959_v9  ;;  %v960_v14 = vld [vmem:[#allocation7 + $0x8] sm:$0xff]   ;;  %v961_v21 = vld [vmem:[#allocation7 + $0x10] sm:$0xff]   ;;  %vm149_vm3 = vcmask 519168   ;;  %vm150_vm4 = vsmask.f32 7938 }
  0x4d   :  { %125 = vst.msk [vmem:[#allocation2] sm:$0xff] %vm124_vm2, %v1130_v0  ;;  %126 = vst.msk [vmem:[#allocation2 + $0x8] sm:$0xff] %vm124_vm2, %v1130_v0  ;;  %v103_v12 = vmul.f32 %v869_v7, %v798_v2  ;;  %v104_v13 = vmul.f32 %v870_v8, %v798_v2  ;;  %289 = vmatprep.subr.bf16.mxu0 %v1130_v0  ;;  %v962_v31 = vld [vmem:[#allocation7 + $0x18] sm:$0xff]   ;;  %v963_v39 = vld [vmem:[#allocation7 + $0x20] sm:$0xff]   ;;  %vm168_vm6 = vcmask 1043968   ;;  %vm283_vm7 = vcmask 523264  }
  0x4e   :  { %v112_v15 = vadd.f32 %v799_v3, %v101_v10  ;;  %v113_v16 = vadd.f32 %v799_v3, %v102_v11  ;;  %vm1285_vm5 = vmand %vm149_vm3, %vm150_vm4  ;;  %v974_v40 = vld [vmem:[#allocation9 + $0x40] sm:$0xff]   ;;  %v964_v45 = vld [vmem:[#allocation7 + $0x28] sm:$0xff]   ;;  %v1131_v4 = vmov 0.0   ;;  %vm1132_vm8 = vmmov 0  }
  0x4f   :  { %v114_v17 = vadd.f32 %v799_v3, %v103_v12  ;;  %v115_v18 = vadd.f32 %v799_v3, %v104_v13  ;;  %882 = vmatprep.subr.bf16.mxu1 %v974_v40  ;;  %v975_v43 = vld [vmem:[#allocation9] sm:$0xff]   ;;  %v965_v47 = vld [vmem:[#allocation7 + $0x30] sm:$0xff]   ;;  %v966_v48 = vld [vmem:[#allocation7 + $0x38] sm:$0xff]   ;;  %vm394_vm9 = vsmask.f32 3328 }
  0x50   :  { %v1268_v19 = vmax.f32 %v112_v15, 0.0  ;;  %v117_v20 = vmax.f32 %v113_v16, 0.0  ;;  %290 = vmatpush1.bf16.msra.mxu0 %v960_v14  ;;  %883 = vmatpush3.bf16.msra.mxu1 %v975_v43  ;;  %v967_v49 = vld [vmem:[#allocation7 + $0x40] sm:$0xff]   ;;  %v968_v50 = vld [vmem:[#allocation7 + $0x48] sm:$0xff]   ;;  %v969_v51 = vld [vmem:[#allocation7 + $0x50] sm:$0xff]  }
  0x51   :  { %v1270_v22 = vmax.f32 %v114_v17, 0.0  ;;  %v119_v23 = vmax.f32 %v115_v18, 0.0  ;;  %291 = vmatprep.subr.bf16.mxu0 %v1130_v0  ;;  %v970_v52 = vld [vmem:[#allocation7 + $0x58] sm:$0xff]   ;;  %v976_v57 = vld [vmem:[#allocation9 + $0x48] sm:$0xff]   ;;  %v978_v59 = vld [vmem:[#allocation9 + $0x50] sm:$0xff]  }
  0x52   :  { %v856_v24 = vpack.c.bf16 %v117_v20, %v117_v20  ;;  %v858_v25 = vpack.c.bf16 %v1268_v19, %v1268_v19  ;;  %v977_v58 = vld [vmem:[#allocation9 + $0x8] sm:$0xff]   ;;  %884 = vmatprep.subr.bf16.mxu1 %v976_v57  ;;  %v979_v60 = vld [vmem:[#allocation9 + $0x10] sm:$0xff]   ;;  %v980_v61 = vld [vmem:[#allocation9 + $0x58] sm:$0xff]  }
  0x53   :  { %v857_v26 = vpack.c.bf16 %v119_v23, %v119_v23  ;;  %v862_v27 = vpack.c.bf16 %v1270_v22, %v1268_v19  ;;  %v859_v30 = vpack.c.bf16 %v1270_v22, %v1270_v22  ;;  %v981_v62 = vld [vmem:[#allocation9 + $0x18] sm:$0xff]   ;;  %v982_v63 = vld [vmem:[#allocation9 + $0x60] sm:$0xff]   ;;  %v984_v1 = vld [vmem:[#allocation9 + $0x68] sm:$0xff]  }
  0x54   :  { %v134_v28 = vshrl.u32 %v856_v24, 16  ;;  %v137_v29 = vshll.u32 %v856_v24, 16  ;;  %162 = vrot.lane.b32.xlu0 %v858_v25, %s1126_s17  ;;  %174 = vst.msk [vmem:[#allocation2 + $0x4] sm:$0xf] %vm149_vm3, %v856_v24  ;;  %292 = vmatpush1.bf16.msra.mxu0 %v961_v21  ;;  %v152_v34 = vld [vmem:[#allocation2] sm:$0xf]  ;;  %vm1322_vm10 = vmand %vm122_vm0, %vm150_vm4 }
  0x55   :  { %v141_v32 = vshrl.u32 %v857_v26, 16  ;;  %v144_v33 = vshll.u32 %v857_v26, 16  ;;  %175 = vst.msk [vmem:[#allocation2 + $0xc] sm:$0xf] %vm149_vm3, %v857_v26  ;;  %293 = vmatprep.subr.bf16.mxu0 %v1130_v0  ;;  %v155_v37 = vld [vmem:[#allocation2 + $0x8] sm:$0xf]  ;;  %885 = vmatpush3.bf16.msra.mxu1 %v977_v58  ;;  %vm1327_vm11 = vmand %vm122_vm0, %vm394_vm9 }
  0x56   :  { %v136_v35 = vrot.slane %v134_v28, 7  ;;  %886 = vmatprep.subr.bf16.mxu1 %v978_v59  ;;  %v985_v2 = vld [vmem:[#allocation10] sm:$0xff]   ;;  %v986_v3 = vld [vmem:[#allocation9 + $0x28] sm:$0xff]   ;;  %v987_v5 = vld [vmem:[#allocation9 + $0x70] sm:$0xff]  }
  0x57   :  { %v143_v38 = vrot.slane %v141_v32, 7  ;;  %v988_v6 = vld [vmem:[#allocation10 + $0x8] sm:$0xff]   ;;  %v989_v7 = vld [vmem:[#allocation9 + $0x30] sm:$0xff]   ;;  %v990_v8 = vld [vmem:[#allocation9 + $0x78] sm:$0xff]  }
  0x58   :  { %v139_v41 = vor.u32 %v137_v29, %v136_v35  ;;  %164 = vrot.lane.b32.xlu0 %v859_v30, %s1126_s17  ;;  %294 = vmatpush1.bf16.msra.mxu0 %v962_v31  ;;  %v991_v9 = vld [vmem:[#allocation10 + $0x10] sm:$0xff]   ;;  %v992_v10 = vld [vmem:[#allocation9 + $0x38] sm:$0xff]   ;;  %v819_v12 = vld [vmem:[%s1366_s3] ss:$0 sm:$0xff]  ;;  %s1133_s3 = smov [#allocation12]  }
  0x59   :  { %v146_v42 = vor.u32 %v144_v33, %v143_v38  ;;  %295 = vmatprep.subr.bf16.mxu0 %v1130_v0  ;;  %887 = vmatpush3.bf16.msra.mxu1 %v979_v60  ;;  %v996_v11 = vld [vmem:[#allocation10 + $0x18] sm:$0xff]   ;;  %v820_v14 = vld [vmem:[%s1367_s4] ss:$0 sm:$0xff]  ;;  %v396_v40 = vld [vmem:[#allocation3 + $0x8] sm:$0xf]  ;;  %s784_s4 = sshll.u32 %s1133_s3, 4  ;;  %s785_s4 = int_to_ptr.vmem [resolvable:$true] %s784_s4 }
  0x5a   :  { %v153_v44 = vsel %vm1285_vm5, %v139_v41, %v152_v34  ;;  %888 = vmatprep.subr.bf16.mxu1 %v980_v61  ;;  %v378_v33 = vld [vmem:[#allocation3] sm:$0xf]  ;;  %v381_v41 = vld [vmem:[#allocation3 + $0xc] sm:$0xf]  ;;  %v1002_v59 = vld [vmem:[#allocation9 + $0xa8] sm:$0xff]   ;;  %s1094_s15 = scalar_lea.vmem %s785_s4, 128  ;;  %p1099_p5 = scmp.lt.s32.totalorder %s785_s4, %s785_s4 }
  0x5b   :  { %154 = vst [vmem:[#allocation2] sm:$0xf] %v153_v44  ;;  %v156_v46 = vsel %vm1285_vm5, %v146_v42, %v155_v37  ;;  %v1000_v57 = vld [vmem:[#allocation9 + $0x98] sm:$0xff]   ;;  %v1001_v58 = vld [vmem:[#allocation9 + $0xa0] sm:$0xff]   ;;  %v1003_v60 = vld [vmem:[#allocation9 + $0xb0] sm:$0xff]   ;;  %p1095_p4 = scmp.ne.s32.totalorder %s785_s4, %s1094_s15  ;;  %p1100_p6 = scmp.lt.s32.totalorder %s1094_s15, %s1094_s15 }
  0x5c   :  { %157 = vst [vmem:[#allocation2 + $0x8] sm:$0xf] %v156_v46  ;;  %296 = vmatpush1.bf16.msra.mxu0 %v963_v39  ;;  %v973_v56 = vld [vmem:[#allocation2 + $0x4] ss:$8 sps:$4 sm:$0xff]   ;;  %v1004_v61 = vld [vmem:[#allocation9 + $0xb8] sm:$0xff]  }
  0x5d   :  { %297 = vmatprep.subr.bf16.mxu0 %v1130_v0  ;;  %818 = vmatprep.mubr.msk.bf16.mxu0 %vm283_vm7, %v973_v56  ;;  %v999_v56 = vld [vmem:[#allocation9 + $0x90] sm:$0xff]   ;;  %p1101_p7 = por %p1100_p6, %p1099_p5 }
  0x5e   :  { %889 = vmatpush3.bf16.msra.mxu1 %v981_v62 }
  0x5f   :  { %890 = vmatprep.subr.bf16.mxu1 %v982_v63  ;;  %p1102_p8 = pnand %p1101_p7, %p1095_p4 }
  0x60   :  { %298 = vmatpush1.bf16.msra.mxu0 %v964_v45 }
  0x61   :  { %299 = vmatprep.subr.bf16.mxu0 %v1130_v0 }
  0x64   :  { %300 = vmatpush1.bf16.msra.mxu0 %v965_v47 }
  0x65   :  { %301 = vmatprep.subr.bf16.mxu0 %v1130_v0 }
  0x68   :  { %302 = vmatpush1.bf16.msra.mxu0 %v966_v48 }
  0x69   :  { %303 = vmatprep.subr.bf16.mxu0 %v1130_v0 }
  0x6c   :  { %304 = vmatpush1.bf16.msra.mxu0 %v967_v49  ;;  %v399_v49 = vld [vmem:[#allocation3 + $0x14] sm:$0xf] }
  0x6d   :  { %305 = vmatprep.subr.bf16.mxu0 %v1130_v0 }
  0x70   :  { %306 = vmatpush1.bf16.msra.mxu0 %v968_v50 }
  0x71   :  { %307 = vmatprep.subr.bf16.mxu0 %v1130_v0 }
  0x74   :  { %308 = vmatpush1.bf16.msra.mxu0 %v969_v51 }
  0x75   :  { %309 = vmatprep.subr.bf16.mxu0 %v1130_v0  ;;  %v983_v0 = vld [vmem:[#allocation9 + $0x20] sm:$0xff]  }
  0x76   :  { %891 = vmatpush3.bf16.msra.mxu1 %v983_v0 }
  0x77   :  { %892 = vmatprep.subr.bf16.mxu1 %v984_v1 }
  0x78   :  { %310 = vmatpush1.bf16.msra.mxu0 %v970_v52  ;;  %v997_v52 = vld [vmem:[#allocation9 + $0x80] sm:$0xff]  }
  0x79   :  { %913 = vmatprep.subr.bf16.mxu0 %v1131_v4 }
  0x7a   :  { %893 = vmatpush3.bf16.msra.mxu1 %v986_v3 }
  0x7b   :  { %894 = vmatprep.subr.bf16.mxu1 %v987_v5 }
  0x7e   :  { %895 = vmatpush3.bf16.msra.mxu1 %v989_v7 }
  0x7f   :  { %896 = vmatprep.subr.bf16.mxu1 %v990_v8 }
  0x82   :  { %897 = vmatpush3.bf16.msra.mxu1 %v992_v10 }
  0x83   :  { %925 = vmatprep.subr.bf16.mxu1 %v1131_v4 }
  0xc6   :  { %v163_v53 = vpop.permute.xlu0 %162 }
  0xc7   :  { %169 = vst.msk [vmem:[#allocation2] sm:$0xf] %vm168_vm6, %v163_v53 }
  0xca   :  { %v165_v54 = vpop.permute.xlu0 %164 }
  0xcb   :  { %170 = vst.msk [vmem:[#allocation2 + $0x8] sm:$0xf] %vm168_vm6, %v165_v54 }
  0xd2   :  { %v971_v55 = vld [vmem:[#allocation2] ss:$8 sps:$4 sm:$0xff]  }
  0xd3   :  { %320 = vmatmul.mubr.bf16.vlgmr.msra.gmra.mrb[0].mxu0 %v971_v55  ;;  %v998_v55 = vld [vmem:[#allocation9 + $0x88] sm:$0xff]  }
  0xd4   :  { %914 = vmatpush3.bf16.msra.mxu0 %v985_v2  ;;  %921 = vmatprep.mubr.msk.bf16.mxu0 %vm1132_vm8, %v1131_v4 }
  0xd5   :  { %915 = vmatprep.subr.bf16.mxu0 %v1131_v4 }
  0xd8   :  { %916 = vmatpush3.bf16.msra.mxu0 %v988_v6 }
  0xd9   :  { %917 = vmatprep.subr.bf16.mxu0 %v1131_v4 }
  0xdc   :  { %918 = vmatpush3.bf16.msra.mxu0 %v991_v9 }
  0xdd   :  { %919 = vmatprep.subr.bf16.mxu0 %v1131_v4 }
  0xe0   :  { %920 = vmatpush3.bf16.msra.mxu0 %v996_v11 }
  0xe3   :  { %922 = vmatmul.mubr.msk.bf16.vlgmr.msra.gmra.mrb[4].mxu0 %vm283_vm7, %v862_v27 }
 0x1a6   :  { %v321_v13 = vpop.f32.mrb[0].mxu0 }
 0x1a7   :  { %v335_v15 = vmul.f32 %v819_v12, %v321_v13  ;;  %v323_v16 = vpop.f32.mrb[1].mxu0 }
 0x1a8   :  { %v324_v17 = vpop.f32.mrb[2].mxu0 }
 0x1a9   :  { %v344_v18 = vadd.f32 %v820_v14, %v335_v15  ;;  %v336_v20 = vmul.f32 %v819_v12, %v324_v17  ;;  %v326_v21 = vpop.f32.mrb[3].mxu0 }
 0x1ab   :  { %v346_v23 = vmax.f32 %v344_v18, 0.0  ;;  %v345_v24 = vadd.f32 %v820_v14, %v336_v20 }
 0x1ad   :  { %v860_v19 = vpack.c.bf16 %v346_v23, %v346_v23  ;;  %v347_v22 = vmax.f32 %v345_v24, 0.0 }
 0x1af   :  { %v361_v25 = vshrl.u32 %v860_v19, 16  ;;  %v364_v26 = vshll.u32 %v860_v19, 16  ;;  %402 = vst [vmem:[#allocation3 + $0x4] sm:$0xf] %v860_v19  ;;  %v861_v27 = vpack.c.bf16 %v347_v22, %v347_v22 }
 0x1b1   :  { %v363_v28 = vrot.slane %v361_v25, 7  ;;  %v384_v29 = vrot.slane %v361_v25, 4  ;;  %v385_v30 = vrot.slane %v364_v26, 5  ;;  %v368_v31 = vshrl.u32 %v861_v27, 16  ;;  %403 = vst [vmem:[#allocation3 + $0x10] sm:$0xf] %v861_v27 }
 0x1b2   :  { %v371_v34 = vshll.u32 %v861_v27, 16 }
 0x1b3   :  { %v366_v35 = vor.u32 %v364_v26, %v363_v28  ;;  %v386_v36 = vor.u32 %v385_v30, %v384_v29  ;;  %v370_v37 = vrot.slane %v368_v31, 7  ;;  %v388_v38 = vrot.slane %v368_v31, 4 }
 0x1b4   :  { %v389_v42 = vrot.slane %v371_v34, 5 }
 0x1b5   :  { %v379_v43 = vsel %vm1322_vm10, %v366_v35, %v378_v33  ;;  %v387_v44 = vrot.slane %v386_v36, 4  ;;  %v373_v45 = vor.u32 %v371_v34, %v370_v37 }
 0x1b6   :  { %380 = vst [vmem:[#allocation3] sm:$0xf] %v379_v43  ;;  %v390_v46 = vor.u32 %v389_v42, %v388_v38  ;;  %v526_v63 = vpop.f32.mrb[4].mxu0 }
 0x1b7   :  { %v397_v47 = vsel %vm1327_vm11, %v387_v44, %v396_v40  ;;  %v382_v48 = vsel %vm1322_vm10, %v373_v45, %v381_v41  ;;  %v923_v0 = vpop.f32.mrb[5].mxu0 }
 0x1b8   :  { %398 = vst [vmem:[#allocation3 + $0x8] sm:$0xf] %v397_v47  ;;  %383 = vst [vmem:[#allocation3 + $0xc] sm:$0xf] %v382_v48  ;;  %v391_v50 = vrot.slane %v390_v46, 4  ;;  %v529_v1 = vpop.f32.mrb[6].mxu0 }
 0x1b9   :  { %v995_v54 = vld [vmem:[#allocation3 + $0x4] ss:$12 sps:$4 sm:$0xff]   ;;  %v924_v2 = vpop.f32.mrb[7].mxu0 }
 0x1ba   :  { %v400_v51 = vsel %vm1327_vm11, %v391_v50, %v399_v49  ;;  %725 = vmatprep.mubr.bf16.mxu1 %v995_v54 }
 0x1bb   :  { %401 = vst [vmem:[#allocation3 + $0x14] sm:$0xf] %v400_v51 }
 0x1bf   :  { %v993_v53 = vld [vmem:[#allocation3] ss:$12 sps:$4 sm:$0xff]  }
 0x1c0   :  { %726 = vmatmul.mubr.bf16.vlgmr.msra.gmra.mrb[0].mxu1 %v993_v53 }
 0x1c1   :  { %926 = vmatpush3.bf16.msra.mxu1 %v997_v52  ;;  %941 = vmatprep.mubr.msk.bf16.mxu1 %vm1132_vm8, %v1131_v4 }
 0x1c2   :  { %927 = vmatprep.subr.bf16.mxu1 %v1131_v4  ;;  %v1005_v62 = vld [vmem:[#allocation3 + $0x8] ss:$12 sps:$4 sm:$0xff]  }
 0x1c5   :  { %928 = vmatpush3.bf16.msra.mxu1 %v998_v55 }
 0x1c6   :  { %929 = vmatprep.subr.bf16.mxu1 %v1131_v4 }
 0x1c9   :  { %930 = vmatpush3.bf16.msra.mxu1 %v999_v56 }
 0x1ca   :  { %931 = vmatprep.subr.bf16.mxu1 %v1131_v4 }
 0x1cd   :  { %932 = vmatpush3.bf16.msra.mxu1 %v1000_v57 }
 0x1ce   :  { %933 = vmatprep.subr.bf16.mxu1 %v1131_v4 }
 0x1d1   :  { %934 = vmatpush3.bf16.msra.mxu1 %v1001_v58 }
 0x1d2   :  { %935 = vmatprep.subr.bf16.mxu1 %v1131_v4 }
 0x1d5   :  { %936 = vmatpush3.bf16.msra.mxu1 %v1002_v59 }
 0x1d6   :  { %937 = vmatprep.subr.bf16.mxu1 %v1131_v4 }
 0x1d9   :  { %938 = vmatpush3.bf16.msra.mxu1 %v1003_v60 }
 0x1da   :  { %939 = vmatprep.subr.bf16.mxu1 %v1131_v4 }
 0x1dd   :  { %940 = vmatpush3.bf16.msra.mxu1 %v1004_v61 }
 0x1e0   :  { %942 = vmatmul.mubr.bf16.vlgmr.msra.gmra.mrb[4].mxu1 %v1005_v62 }
 0x293   :  { %v898_v3 = vpop.f32.mrb[0].mxu1 }
 0x294   :  { %v899_v5 = vpop.f32.mrb[1].mxu1 }
 0x295   :  { %v900_v6 = vadd.f32 %v899_v5, %v898_v3  ;;  %v901_v7 = vpop.f32.mrb[2].mxu1 }
 0x296   :  { %v902_v8 = vpop.f32.mrb[3].mxu1 }
 0x297   :  { %v728_v9 = vadd.f32 %v900_v6, %v526_v63  ;;  %v903_v10 = vadd.f32 %v902_v8, %v901_v7 }
 0x299   :  { %v731_v11 = vadd.f32 %v903_v10, %v529_v1 }
 0x2b3   :  { %v768_v12 = vpop.f32.mrb[4].mxu1 }
 0x2b4   :  { %v769_v13 = vadd.f32 %v768_v12, %v728_v9  ;;  %v943_v14 = vpop.f32.mrb[5].mxu1 }
 0x2b5   :  { %v771_v15 = vpop.f32.mrb[6].mxu1 }
 0x2b6   :  { %v772_v4 = vadd.f32 %v771_v15, %v731_v11  ;;  %v944_v16 = vpop.f32.mrb[7].mxu1 }
 0x2b8   :  { %v874_v17 = vpack.c.bf16 %v772_v4, %v769_v13 }
 0x2ba   :  { %875 = vst [vmem:[#allocation12] sm:$0xff] %v874_v17  }
 0x2bb   :  { %1105 = shalt.err (!%p1102_p8)
}
 0x2bc   :  { %s1106_s20 = scalar_lea.hbm %s1371_s8, 128 }
 0x2bd   :  { %p1107_p9 = scmp.ne.s32.totalorder %s1371_s8, %s1106_s20  ;;  %p1110_p10 = scmp.lt.u32.totalorder %s1106_s20, %s1371_s8 }
 0x2bf   :  { %p1112_p11 = pnand %p1110_p10, %p1107_p9 }
 0x2c1   :  { %1115 = shalt.err (!%p1112_p11)
}
 0x2c2   :  { %790 = dma.vmem_to_hbm [thread:$0]  %s785_s4, 128, %s1371_s8, [#allocation6], %s1126_s17, %s1126_s17, %s1127_s18  }
 0x2c3   :  { %1122 = dma.done.wait [#allocation6], 128  }
 0x2c4   :  { %1123 = vsyncadd [#allocation6], 4294967168 }
 0x2c5   :  { %794 = vsyncpa [#allocation5], 1 }
 0x2c6   :  { %795 = vsyncpa [#allocation8], 1 }
 0x2c7   :  { %796 = vsyncpa [#allocation11], 1 }
 0x2c8   :  { %797 = vsyncpa [#allocation6], 1 }

</bundles_post_ra>
